<compile_context>
chip_gen: v7x
topology: tpu7x:2x2x1
jax: 0.10.0
libtpu: 0.0.40
codegen_flags: <defaults>
</compile_context>

<pallas_src>
import functools

import numpy as np
import jax
import jax.numpy as jnp
from jax.experimental import pallas as pl
from jax.experimental.pallas import tpu as pltpu


# ----------------------------------------------------------------------------
# helpers
# ----------------------------------------------------------------------------
def _round_up(x, m):
    return ((x + m - 1) // m) * m


def _choose_row_tile(p_rows, batch):
    """Pick a (rows, 128) tile; rows padded to a multiple of 8 (sublanes).

    For batch >= 2 take the largest divisor tile (<= 1024 rows, keeps all
    buffers well under a few MiB of VMEM) -- the batch grid axis already feeds
    both v7x TensorCores, extra row blocks are pure per-step overhead.
    Only at batch == 1 prefer >= 2 row blocks so a megacore chip still gets
    two parallel grid steps (harmless on single-TC v5e/v6e).
    """
    p8 = _round_up(max(p_rows, 8), 8)
    max_t = min(p8, 1024)
    single_best = None
    for t in range(max_t, 7, -8):
        if p8 % t != 0:
            continue
        if batch >= 2 or t * 2 <= p8:
            return t, p8
        if single_best is None:
            single_best = t
    return (single_best if single_best is not None else p8), p8


# ----------------------------------------------------------------------------
# Pallas kernel: fused TPS warp over a lane-dense tile of grid points
# ----------------------------------------------------------------------------
def _tps_kernel(cx_ref, cy_ref, gx_ref, gy_ref, o_ref, *, n_ctrl, px, py):
    """cx/cy: SMEM [B*(n_ctrl+3)] flat coefficients per batch = [W(n) | A(3)].
    gx/gy: VMEM (TR, 128) grid x/y coords (batch-invariant tile).
    o: VMEM (2, TR, 128): o[0] = warped x, o[1] = warped y."""
    b = pl.program_id(1)                    # batch is the innermost grid axis
    base = b * (n_ctrl + 3)
    gx = gx_ref[...]
    gy = gy_ref[...]

    # affine part: A0 + A1*x + A2*y  (scalar reads from SMEM, VPU broadcast)
    out_x = (cx_ref[base + n_ctrl] + cx_ref[base + n_ctrl + 1] * gx
             + cx_ref[base + n_ctrl + 2] * gy)
    out_y = (cy_ref[base + n_ctrl] + cy_ref[base + n_ctrl + 1] * gx
             + cy_ref[base + n_ctrl + 2] * gy)

    # radial-basis part: sum_n W_n * d^2 log d^2 ; U shared between X and Y
    for n in range(n_ctrl):
        dx = gx - px[n]                     # control points baked as constants
        dy = gy - py[n]
        d2 = dx * dx + dy * dy
        # max() clamp: 0 * log(1e-30) == 0 exactly at coincident points,
        # one VALU op instead of a compare + select.
        u = d2 * jnp.log(jnp.maximum(d2, 1e-30))   # log -> EUP slot
        out_x = out_x + cx_ref[base + n] * u
        out_y = out_y + cy_ref[base + n] * u

    o_ref[0] = out_x
    o_ref[1] = out_y


def _tps_warp_pallas(coef_x, coef_y, gx2d, gy2d, *, batch, tr, n_ctrl, px, py):
    """coef_*: flat [B*(n_ctrl+3)] f32; gx2d/gy2d: [p_rows_pad, 128] f32.
    Returns fused output [B, 2, p_rows_pad, 128] f32 (dim1: 0 = x, 1 = y)."""
    p_rows_pad = gx2d.shape[0]
    n_row_blocks = p_rows_pad // tr
    # batch innermost: gx/gy block index (r, 0) is constant across consecutive
    # steps -> Pallas skips the redundant input copies.
    grid = (n_row_blocks, batch)

    def in_map(r, b, cx, cy):               # scalar-prefetch refs ignored
        return (r, 0)

    def out_map(r, b, cx, cy):
        return (b, 0, r, 0)

    elems = batch * p_rows_pad * 128
    cost = pl.CostEstimate(
        flops=elems * (13 * n_ctrl + 10),
        transcendentals=elems * n_ctrl,
        bytes_accessed=(2 * p_rows_pad * 128 * 4       # gx, gy read once
                        + 2 * elems * 4                # fused output write
                        + 4 * (coef_x.size + coef_y.size)))

    kernel = functools.partial(_tps_kernel, n_ctrl=n_ctrl, px=px, py=py)
    return pl.pallas_call(
        kernel,
        out_shape=jax.ShapeDtypeStruct((batch, 2, p_rows_pad, 128),
                                       jnp.float32),
        grid_spec=pltpu.PrefetchScalarGridSpec(
            num_scalar_prefetch=2,          # coef_x, coef_y -> SMEM (1-D)
            grid=grid,
            in_specs=[pl.BlockSpec((tr, 128), in_map),
                      pl.BlockSpec((tr, 128), in_map)],
            out_specs=pl.BlockSpec((None, 2, tr, 128), out_map),
        ),
        compiler_params=pltpu.CompilerParams(
            dimension_semantics=("parallel", "parallel")),
        cost_estimate=cost,
    )(coef_x, coef_y, gx2d, gy2d)


# ----------------------------------------------------------------------------
# module constructor — mirrors TpsGridGen.__init__ (host-side constants)
# ----------------------------------------------------------------------------
def make_tps_grid_gen(out_h=256, out_w=192, grid_size=3):
    """Returns a jit-able forward(theta[B, 2*N]) -> warped grid [B, H, W, 2]."""
    N = grid_size * grid_size

    # control points, exactly as the PyTorch module builds them
    axis_coords = np.linspace(-1, 1, grid_size)
    P_Y, P_X = np.meshgrid(axis_coords, axis_coords)
    P_X = P_X.reshape(-1).astype(np.float64)
    P_Y = P_Y.reshape(-1).astype(np.float64)

    # L^{-1} (TPS system matrix inverse) — static module constant, host numpy.
    # TODO(synk): the 12x12 torch.inverse has no Pallas equivalent; it is a
    # compile-time constant here (np.linalg.inv).
    d2 = (P_X[:, None] - P_X[None, :]) ** 2 + (P_Y[:, None] - P_Y[None, :]) ** 2
    d2[d2 == 0] = 1.0
    K = d2 * np.log(d2)
    P = np.stack([np.ones(N), P_X, P_Y], axis=1)             # [N, 3]
    L = np.zeros((N + 3, N + 3))
    L[:N, :N] = K
    L[:N, N:] = P
    L[N:, :N] = P.T
    Li = np.linalg.inv(L)
    # coef[b] = Li[:N+3, :N] @ Q[b]  <=>  coef = Q @ Li[:, :N].T
    solve_T = jnp.asarray(Li[:, :N].T, dtype=jnp.float32)    # [N, N+3]

    # dense sampling grid, flattened to a lane-dense [rows, 128] layout
    gx_row = np.linspace(-1, 1, out_w)
    gy_col = np.linspace(-1, 1, out_h)
    grid_X = np.broadcast_to(gx_row[None, :], (out_h, out_w)).reshape(-1)
    grid_Y = np.broadcast_to(gy_col[:, None], (out_h, out_w)).reshape(-1)
    hw = out_h * out_w
    p_rows = -(-hw // 128)
    p_rows_pad = _round_up(max(p_rows, 8), 8)
    pad = p_rows_pad * 128 - hw
    gx2d = jnp.asarray(np.pad(grid_X, (0, pad)).reshape(p_rows_pad, 128),
                       dtype=jnp.float32)
    gy2d = jnp.asarray(np.pad(grid_Y, (0, pad)).reshape(p_rows_pad, 128),
                       dtype=jnp.float32)

    px = tuple(float(v) for v in P_X)
    py = tuple(float(v) for v in P_Y)
    px_base = jnp.asarray(P_X, dtype=jnp.float32)             # [N]
    py_base = jnp.asarray(P_Y, dtype=jnp.float32)

    def forward(theta):
        if theta.ndim == 4:                 # accept [B, 2N, 1, 1] like PyTorch
            theta = theta.reshape(theta.shape[0], theta.shape[1])
        theta = theta.astype(jnp.float32)
        B = theta.shape[0]
        tr, _ = _choose_row_tile(p_rows, B)   # B-aware tile (static under jit)

        # tiny per-batch TPS solve ([B,N] @ [N,N+3]) — plain XLA, full f32
        q_x = theta[:, :N] + px_base[None, :]
        q_y = theta[:, N:] + py_base[None, :]
        coef_x = jnp.dot(q_x, solve_T, precision=jax.lax.Precision.HIGHEST)
        coef_y = jnp.dot(q_y, solve_T, precision=jax.lax.Precision.HIGHEST)

        out = _tps_warp_pallas(coef_x.reshape(-1), coef_y.reshape(-1),
                               gx2d, gy2d, batch=B, tr=tr,
                               n_ctrl=N, px=px, py=py)        # [B,2,rows,128]
        out = out.reshape(B, 2, p_rows_pad * 128)[:, :, :hw]
        out = out.reshape(B, 2, out_h, out_w)
        return jnp.moveaxis(out, 1, -1)                       # [B, H, W, 2]

    return forward


# ----------------------------------------------------------------------------
# pure numpy reference (mirrors apply_transformation) for correctness check
# ----------------------------------------------------------------------------
def _tps_reference(theta, out_h, out_w, grid_size=3):
    N = grid_size * grid_size
    axis_coords = np.linspace(-1, 1, grid_size)
    P_Y, P_X = np.meshgrid(axis_coords, axis_coords)
    P_X = P_X.reshape(-1)
    P_Y = P_Y.reshape(-1)
    d2 = (P_X[:, None] - P_X[None, :]) ** 2 + (P_Y[:, None] - P_Y[None, :]) ** 2
    d2[d2 == 0] = 1.0
    K = d2 * np.log(d2)
    P = np.stack([np.ones(N), P_X, P_Y], axis=1)
    L = np.zeros((N + 3, N + 3))
    L[:N, :N] = K
    L[:N, N:] = P
    L[N:, :N] = P.T
    Li = np.linalg.inv(L)

    theta = np.asarray(theta, dtype=np.float64)
    q_x = theta[:, :N] + P_X[None, :]
    q_y = theta[:, N:] + P_Y[None, :]
    w_x = q_x @ Li[:N, :N].T
    w_y = q_y @ Li[:N, :N].T
    a_x = q_x @ Li[N:, :N].T
    a_y = q_y @ Li[N:, :N].T

    gx = np.broadcast_to(np.linspace(-1, 1, out_w)[None, :], (out_h, out_w))
    gy = np.broadcast_to(np.linspace(-1, 1, out_h)[:, None], (out_h, out_w))
    dd = (gx[..., None] - P_X) ** 2 + (gy[..., None] - P_Y) ** 2
    dd[dd == 0] = 1.0
    U = dd * np.log(dd)                                       # [H, W, N]
    ox = (a_x[:, None, None, 0] + a_x[:, None, None, 1] * gx
          + a_x[:, None, None, 2] * gy + np.einsum('hwn,bn->bhw', U, w_x))
    oy = (a_y[:, None, None, 0] + a_y[:, None, None, 1] * gx
          + a_y[:, None, None, 2] * gy + np.einsum('hwn,bn->bhw', U, w_y))
    return np.stack([ox, oy], axis=-1).astype(np.float32)


if __name__ == "__main__":
    # Small shapes consistent with the module (defaults are 256x192, grid 3x3)
    OUT_H, OUT_W, GRID_SIZE = 32, 24, 3
    N = GRID_SIZE * GRID_SIZE
    B = 2

    key = jax.random.PRNGKey(0)
    theta = 0.1 * jax.random.normal(key, (B, 2 * N), jnp.float32)

    fwd = jax.jit(make_tps_grid_gen(out_h=OUT_H, out_w=OUT_W,
                                    grid_size=GRID_SIZE))
    warped = jax.block_until_ready(fwd(theta))

    assert warped.shape == (B, OUT_H, OUT_W, 2), warped.shape
    assert bool(jnp.all(jnp.isfinite(warped)))

    ref = _tps_reference(np.asarray(theta), OUT_H, OUT_W, GRID_SIZE)
    err = float(np.max(np.abs(np.asarray(warped) - ref)))
    assert np.allclose(np.asarray(warped), ref, atol=2e-3, rtol=2e-3), err

    print("KERNEL_OK")
</pallas_src>

<mosaic_0001>
module attributes {stable_mosaic.version = 11 : i64} {
  func.func @_tps_kernel(%arg0: i32, %arg1: i32, %arg2: memref<24xf32, #tpu.memory_space<smem>>, %arg3: memref<24xf32, #tpu.memory_space<smem>>, %arg4: memref<8x128xf32, #tpu.memory_space<vmem>>, %arg5: memref<8x128xf32, #tpu.memory_space<vmem>>, %arg6: memref<1x2x8x128xf32, #tpu.memory_space<vmem>>) attributes {dimension_semantics = [#tpu.dimension_semantics<parallel>, #tpu.dimension_semantics<parallel>], iteration_bounds = array<i64: 1, 2>, scalar_prefetch = 2 : i64, scratch_operands = 0 : i64, tpu.core_type = #tpu.core_type<tc>, window_params = [{transform_indices = @transform_0, window_bounds = array<i64: 8, 128>}, {transform_indices = @transform_1, window_bounds = array<i64: 8, 128>}, {transform_indices = @transform_2, window_bounds = array<i64: 1, 2, 8, 128>}]} {
    %c12_i32 = arith.constant 12 : i32
    %0 = arith.muli %arg1, %c12_i32 : i32
    %c0 = arith.constant 0 : index
    %c0_0 = arith.constant 0 : index
    %1 = vector.load %arg4[%c0, %c0_0] : memref<8x128xf32, #tpu.memory_space<vmem>>, vector<8x128xf32>
    %c0_1 = arith.constant 0 : index
    %c0_2 = arith.constant 0 : index
    %2 = vector.load %arg5[%c0_1, %c0_2] : memref<8x128xf32, #tpu.memory_space<vmem>>, vector<8x128xf32>
    %c9_i32 = arith.constant 9 : i32
    %3 = arith.addi %0, %c9_i32 : i32
    %4 = arith.index_cast %3 : i32 to index
    %5 = memref.load %arg2[%4] : memref<24xf32, #tpu.memory_space<smem>>
    %c9_i32_3 = arith.constant 9 : i32
    %6 = arith.addi %0, %c9_i32_3 : i32
    %c1_i32 = arith.constant 1 : i32
    %7 = arith.addi %6, %c1_i32 : i32
    %8 = arith.index_cast %7 : i32 to index
    %9 = memref.load %arg2[%8] : memref<24xf32, #tpu.memory_space<smem>>
    %10 = vector.broadcast %9 : f32 to vector<8x128xf32>
    %11 = arith.mulf %10, %1 : vector<8x128xf32>
    %12 = vector.broadcast %5 : f32 to vector<8x128xf32>
    %13 = arith.addf %12, %11 : vector<8x128xf32>
    %c9_i32_4 = arith.constant 9 : i32
    %14 = arith.addi %0, %c9_i32_4 : i32
    %c2_i32 = arith.constant 2 : i32
    %15 = arith.addi %14, %c2_i32 : i32
    %16 = arith.index_cast %15 : i32 to index
    %17 = memref.load %arg2[%16] : memref<24xf32, #tpu.memory_space<smem>>
    %18 = vector.broadcast %17 : f32 to vector<8x128xf32>
    %19 = arith.mulf %18, %2 : vector<8x128xf32>
    %20 = arith.addf %13, %19 : vector<8x128xf32>
    %c9_i32_5 = arith.constant 9 : i32
    %21 = arith.addi %0, %c9_i32_5 : i32
    %22 = arith.index_cast %21 : i32 to index
    %23 = memref.load %arg3[%22] : memref<24xf32, #tpu.memory_space<smem>>
    %c9_i32_6 = arith.constant 9 : i32
    %24 = arith.addi %0, %c9_i32_6 : i32
    %c1_i32_7 = arith.constant 1 : i32
    %25 = arith.addi %24, %c1_i32_7 : i32
    %26 = arith.index_cast %25 : i32 to index
    %27 = memref.load %arg3[%26] : memref<24xf32, #tpu.memory_space<smem>>
    %28 = vector.broadcast %27 : f32 to vector<8x128xf32>
    %29 = arith.mulf %28, %1 : vector<8x128xf32>
    %30 = vector.broadcast %23 : f32 to vector<8x128xf32>
    %31 = arith.addf %30, %29 : vector<8x128xf32>
    %c9_i32_8 = arith.constant 9 : i32
    %32 = arith.addi %0, %c9_i32_8 : i32
    %c2_i32_9 = arith.constant 2 : i32
    %33 = arith.addi %32, %c2_i32_9 : i32
    %34 = arith.index_cast %33 : i32 to index
    %35 = memref.load %arg3[%34] : memref<24xf32, #tpu.memory_space<smem>>
    %36 = vector.broadcast %35 : f32 to vector<8x128xf32>
    %37 = arith.mulf %36, %2 : vector<8x128xf32>
    %38 = arith.addf %31, %37 : vector<8x128xf32>
    %cst = arith.constant -1.000000e+00 : f32
    %39 = vector.broadcast %cst : f32 to vector<8x128xf32>
    %40 = arith.subf %1, %39 : vector<8x128xf32>
    %cst_10 = arith.constant -1.000000e+00 : f32
    %41 = vector.broadcast %cst_10 : f32 to vector<8x128xf32>
    %42 = arith.subf %2, %41 : vector<8x128xf32>
    %43 = arith.mulf %40, %40 : vector<8x128xf32>
    %44 = arith.mulf %42, %42 : vector<8x128xf32>
    %45 = arith.addf %43, %44 : vector<8x128xf32>
    %cst_11 = arith.constant 1.000000e-30 : f32
    %46 = vector.broadcast %cst_11 : f32 to vector<8x128xf32>
    %47 = arith.maximumf %45, %46 : vector<8x128xf32>
    %48 = math.log %47 : vector<8x128xf32>
    %49 = arith.mulf %45, %48 : vector<8x128xf32>
    %c0_i32 = arith.constant 0 : i32
    %50 = arith.addi %0, %c0_i32 : i32
    %51 = arith.index_cast %50 : i32 to index
    %52 = memref.load %arg2[%51] : memref<24xf32, #tpu.memory_space<smem>>
    %53 = vector.broadcast %52 : f32 to vector<8x128xf32>
    %54 = arith.mulf %53, %49 : vector<8x128xf32>
    %55 = arith.addf %20, %54 : vector<8x128xf32>
    %c0_i32_12 = arith.constant 0 : i32
    %56 = arith.addi %0, %c0_i32_12 : i32
    %57 = arith.index_cast %56 : i32 to index
    %58 = memref.load %arg3[%57] : memref<24xf32, #tpu.memory_space<smem>>
    %59 = vector.broadcast %58 : f32 to vector<8x128xf32>
    %60 = arith.mulf %59, %49 : vector<8x128xf32>
    %61 = arith.addf %38, %60 : vector<8x128xf32>
    %cst_13 = arith.constant -1.000000e+00 : f32
    %62 = vector.broadcast %cst_13 : f32 to vector<8x128xf32>
    %63 = arith.subf %1, %62 : vector<8x128xf32>
    %cst_14 = arith.constant 0.000000e+00 : f32
    %64 = vector.broadcast %cst_14 : f32 to vector<8x128xf32>
    %65 = arith.subf %2, %64 : vector<8x128xf32>
    %66 = arith.mulf %63, %63 : vector<8x128xf32>
    %67 = arith.mulf %65, %65 : vector<8x128xf32>
    %68 = arith.addf %66, %67 : vector<8x128xf32>
    %cst_15 = arith.constant 1.000000e-30 : f32
    %69 = vector.broadcast %cst_15 : f32 to vector<8x128xf32>
    %70 = arith.maximumf %68, %69 : vector<8x128xf32>
    %71 = math.log %70 : vector<8x128xf32>
    %72 = arith.mulf %68, %71 : vector<8x128xf32>
    %c1_i32_16 = arith.constant 1 : i32
    %73 = arith.addi %0, %c1_i32_16 : i32
    %74 = arith.index_cast %73 : i32 to index
    %75 = memref.load %arg2[%74] : memref<24xf32, #tpu.memory_space<smem>>
    %76 = vector.broadcast %75 : f32 to vector<8x128xf32>
    %77 = arith.mulf %76, %72 : vector<8x128xf32>
    %78 = arith.addf %55, %77 : vector<8x128xf32>
    %c1_i32_17 = arith.constant 1 : i32
    %79 = arith.addi %0, %c1_i32_17 : i32
    %80 = arith.index_cast %79 : i32 to index
    %81 = memref.load %arg3[%80] : memref<24xf32, #tpu.memory_space<smem>>
    %82 = vector.broadcast %81 : f32 to vector<8x128xf32>
    %83 = arith.mulf %82, %72 : vector<8x128xf32>
    %84 = arith.addf %61, %83 : vector<8x128xf32>
    %cst_18 = arith.constant -1.000000e+00 : f32
    %85 = vector.broadcast %cst_18 : f32 to vector<8x128xf32>
    %86 = arith.subf %1, %85 : vector<8x128xf32>
    %cst_19 = arith.constant 1.000000e+00 : f32
    %87 = vector.broadcast %cst_19 : f32 to vector<8x128xf32>
    %88 = arith.subf %2, %87 : vector<8x128xf32>
    %89 = arith.mulf %86, %86 : vector<8x128xf32>
    %90 = arith.mulf %88, %88 : vector<8x128xf32>
    %91 = arith.addf %89, %90 : vector<8x128xf32>
    %cst_20 = arith.constant 1.000000e-30 : f32
    %92 = vector.broadcast %cst_20 : f32 to vector<8x128xf32>
    %93 = arith.maximumf %91, %92 : vector<8x128xf32>
    %94 = math.log %93 : vector<8x128xf32>
    %95 = arith.mulf %91, %94 : vector<8x128xf32>
    %c2_i32_21 = arith.constant 2 : i32
    %96 = arith.addi %0, %c2_i32_21 : i32
    %97 = arith.index_cast %96 : i32 to index
    %98 = memref.load %arg2[%97] : memref<24xf32, #tpu.memory_space<smem>>
    %99 = vector.broadcast %98 : f32 to vector<8x128xf32>
    %100 = arith.mulf %99, %95 : vector<8x128xf32>
    %101 = arith.addf %78, %100 : vector<8x128xf32>
    %c2_i32_22 = arith.constant 2 : i32
    %102 = arith.addi %0, %c2_i32_22 : i32
    %103 = arith.index_cast %102 : i32 to index
    %104 = memref.load %arg3[%103] : memref<24xf32, #tpu.memory_space<smem>>
    %105 = vector.broadcast %104 : f32 to vector<8x128xf32>
    %106 = arith.mulf %105, %95 : vector<8x128xf32>
    %107 = arith.addf %84, %106 : vector<8x128xf32>
    %cst_23 = arith.constant 0.000000e+00 : f32
    %108 = vector.broadcast %cst_23 : f32 to vector<8x128xf32>
    %109 = arith.subf %1, %108 : vector<8x128xf32>
    %cst_24 = arith.constant -1.000000e+00 : f32
    %110 = vector.broadcast %cst_24 : f32 to vector<8x128xf32>
    %111 = arith.subf %2, %110 : vector<8x128xf32>
    %112 = arith.mulf %109, %109 : vector<8x128xf32>
    %113 = arith.mulf %111, %111 : vector<8x128xf32>
    %114 = arith.addf %112, %113 : vector<8x128xf32>
    %cst_25 = arith.constant 1.000000e-30 : f32
    %115 = vector.broadcast %cst_25 : f32 to vector<8x128xf32>
    %116 = arith.maximumf %114, %115 : vector<8x128xf32>
    %117 = math.log %116 : vector<8x128xf32>
    %118 = arith.mulf %114, %117 : vector<8x128xf32>
    %c3_i32 = arith.constant 3 : i32
    %119 = arith.addi %0, %c3_i32 : i32
    %120 = arith.index_cast %119 : i32 to index
    %121 = memref.load %arg2[%120] : memref<24xf32, #tpu.memory_space<smem>>
    %122 = vector.broadcast %121 : f32 to vector<8x128xf32>
    %123 = arith.mulf %122, %118 : vector<8x128xf32>
    %124 = arith.addf %101, %123 : vector<8x128xf32>
    %c3_i32_26 = arith.constant 3 : i32
    %125 = arith.addi %0, %c3_i32_26 : i32
    %126 = arith.index_cast %125 : i32 to index
    %127 = memref.load %arg3[%126] : memref<24xf32, #tpu.memory_space<smem>>
    %128 = vector.broadcast %127 : f32 to vector<8x128xf32>
    %129 = arith.mulf %128, %118 : vector<8x128xf32>
    %130 = arith.addf %107, %129 : vector<8x128xf32>
    %cst_27 = arith.constant 0.000000e+00 : f32
    %131 = vector.broadcast %cst_27 : f32 to vector<8x128xf32>
    %132 = arith.subf %1, %131 : vector<8x128xf32>
    %cst_28 = arith.constant 0.000000e+00 : f32
    %133 = vector.broadcast %cst_28 : f32 to vector<8x128xf32>
    %134 = arith.subf %2, %133 : vector<8x128xf32>
    %135 = arith.mulf %132, %132 : vector<8x128xf32>
    %136 = arith.mulf %134, %134 : vector<8x128xf32>
    %137 = arith.addf %135, %136 : vector<8x128xf32>
    %cst_29 = arith.constant 1.000000e-30 : f32
    %138 = vector.broadcast %cst_29 : f32 to vector<8x128xf32>
    %139 = arith.maximumf %137, %138 : vector<8x128xf32>
    %140 = math.log %139 : vector<8x128xf32>
    %141 = arith.mulf %137, %140 : vector<8x128xf32>
    %c4_i32 = arith.constant 4 : i32
    %142 = arith.addi %0, %c4_i32 : i32
    %143 = arith.index_cast %142 : i32 to index
    %144 = memref.load %arg2[%143] : memref<24xf32, #tpu.memory_space<smem>>
    %145 = vector.broadcast %144 : f32 to vector<8x128xf32>
    %146 = arith.mulf %145, %141 : vector<8x128xf32>
    %147 = arith.addf %124, %146 : vector<8x128xf32>
    %c4_i32_30 = arith.constant 4 : i32
    %148 = arith.addi %0, %c4_i32_30 : i32
    %149 = arith.index_cast %148 : i32 to index
    %150 = memref.load %arg3[%149] : memref<24xf32, #tpu.memory_space<smem>>
    %151 = vector.broadcast %150 : f32 to vector<8x128xf32>
    %152 = arith.mulf %151, %141 : vector<8x128xf32>
    %153 = arith.addf %130, %152 : vector<8x128xf32>
    %cst_31 = arith.constant 0.000000e+00 : f32
    %154 = vector.broadcast %cst_31 : f32 to vector<8x128xf32>
    %155 = arith.subf %1, %154 : vector<8x128xf32>
    %cst_32 = arith.constant 1.000000e+00 : f32
    %156 = vector.broadcast %cst_32 : f32 to vector<8x128xf32>
    %157 = arith.subf %2, %156 : vector<8x128xf32>
    %158 = arith.mulf %155, %155 : vector<8x128xf32>
    %159 = arith.mulf %157, %157 : vector<8x128xf32>
    %160 = arith.addf %158, %159 : vector<8x128xf32>
    %cst_33 = arith.constant 1.000000e-30 : f32
    %161 = vector.broadcast %cst_33 : f32 to vector<8x128xf32>
    %162 = arith.maximumf %160, %161 : vector<8x128xf32>
    %163 = math.log %162 : vector<8x128xf32>
    %164 = arith.mulf %160, %163 : vector<8x128xf32>
    %c5_i32 = arith.constant 5 : i32
    %165 = arith.addi %0, %c5_i32 : i32
    %166 = arith.index_cast %165 : i32 to index
    %167 = memref.load %arg2[%166] : memref<24xf32, #tpu.memory_space<smem>>
    %168 = vector.broadcast %167 : f32 to vector<8x128xf32>
    %169 = arith.mulf %168, %164 : vector<8x128xf32>
    %170 = arith.addf %147, %169 : vector<8x128xf32>
    %c5_i32_34 = arith.constant 5 : i32
    %171 = arith.addi %0, %c5_i32_34 : i32
    %172 = arith.index_cast %171 : i32 to index
    %173 = memref.load %arg3[%172] : memref<24xf32, #tpu.memory_space<smem>>
    %174 = vector.broadcast %173 : f32 to vector<8x128xf32>
    %175 = arith.mulf %174, %164 : vector<8x128xf32>
    %176 = arith.addf %153, %175 : vector<8x128xf32>
    %cst_35 = arith.constant 1.000000e+00 : f32
    %177 = vector.broadcast %cst_35 : f32 to vector<8x128xf32>
    %178 = arith.subf %1, %177 : vector<8x128xf32>
    %cst_36 = arith.constant -1.000000e+00 : f32
    %179 = vector.broadcast %cst_36 : f32 to vector<8x128xf32>
    %180 = arith.subf %2, %179 : vector<8x128xf32>
    %181 = arith.mulf %178, %178 : vector<8x128xf32>
    %182 = arith.mulf %180, %180 : vector<8x128xf32>
    %183 = arith.addf %181, %182 : vector<8x128xf32>
    %cst_37 = arith.constant 1.000000e-30 : f32
    %184 = vector.broadcast %cst_37 : f32 to vector<8x128xf32>
    %185 = arith.maximumf %183, %184 : vector<8x128xf32>
    %186 = math.log %185 : vector<8x128xf32>
    %187 = arith.mulf %183, %186 : vector<8x128xf32>
    %c6_i32 = arith.constant 6 : i32
    %188 = arith.addi %0, %c6_i32 : i32
    %189 = arith.index_cast %188 : i32 to index
    %190 = memref.load %arg2[%189] : memref<24xf32, #tpu.memory_space<smem>>
    %191 = vector.broadcast %190 : f32 to vector<8x128xf32>
    %192 = arith.mulf %191, %187 : vector<8x128xf32>
    %193 = arith.addf %170, %192 : vector<8x128xf32>
    %c6_i32_38 = arith.constant 6 : i32
    %194 = arith.addi %0, %c6_i32_38 : i32
    %195 = arith.index_cast %194 : i32 to index
    %196 = memref.load %arg3[%195] : memref<24xf32, #tpu.memory_space<smem>>
    %197 = vector.broadcast %196 : f32 to vector<8x128xf32>
    %198 = arith.mulf %197, %187 : vector<8x128xf32>
    %199 = arith.addf %176, %198 : vector<8x128xf32>
    %cst_39 = arith.constant 1.000000e+00 : f32
    %200 = vector.broadcast %cst_39 : f32 to vector<8x128xf32>
    %201 = arith.subf %1, %200 : vector<8x128xf32>
    %cst_40 = arith.constant 0.000000e+00 : f32
    %202 = vector.broadcast %cst_40 : f32 to vector<8x128xf32>
    %203 = arith.subf %2, %202 : vector<8x128xf32>
    %204 = arith.mulf %201, %201 : vector<8x128xf32>
    %205 = arith.mulf %203, %203 : vector<8x128xf32>
    %206 = arith.addf %204, %205 : vector<8x128xf32>
    %cst_41 = arith.constant 1.000000e-30 : f32
    %207 = vector.broadcast %cst_41 : f32 to vector<8x128xf32>
    %208 = arith.maximumf %206, %207 : vector<8x128xf32>
    %209 = math.log %208 : vector<8x128xf32>
    %210 = arith.mulf %206, %209 : vector<8x128xf32>
    %c7_i32 = arith.constant 7 : i32
    %211 = arith.addi %0, %c7_i32 : i32
    %212 = arith.index_cast %211 : i32 to index
    %213 = memref.load %arg2[%212] : memref<24xf32, #tpu.memory_space<smem>>
    %214 = vector.broadcast %213 : f32 to vector<8x128xf32>
    %215 = arith.mulf %214, %210 : vector<8x128xf32>
    %216 = arith.addf %193, %215 : vector<8x128xf32>
    %c7_i32_42 = arith.constant 7 : i32
    %217 = arith.addi %0, %c7_i32_42 : i32
    %218 = arith.index_cast %217 : i32 to index
    %219 = memref.load %arg3[%218] : memref<24xf32, #tpu.memory_space<smem>>
    %220 = vector.broadcast %219 : f32 to vector<8x128xf32>
    %221 = arith.mulf %220, %210 : vector<8x128xf32>
    %222 = arith.addf %199, %221 : vector<8x128xf32>
    %cst_43 = arith.constant 1.000000e+00 : f32
    %223 = vector.broadcast %cst_43 : f32 to vector<8x128xf32>
    %224 = arith.subf %1, %223 : vector<8x128xf32>
    %cst_44 = arith.constant 1.000000e+00 : f32
    %225 = vector.broadcast %cst_44 : f32 to vector<8x128xf32>
    %226 = arith.subf %2, %225 : vector<8x128xf32>
    %227 = arith.mulf %224, %224 : vector<8x128xf32>
    %228 = arith.mulf %226, %226 : vector<8x128xf32>
    %229 = arith.addf %227, %228 : vector<8x128xf32>
    %cst_45 = arith.constant 1.000000e-30 : f32
    %230 = vector.broadcast %cst_45 : f32 to vector<8x128xf32>
    %231 = arith.maximumf %229, %230 : vector<8x128xf32>
    %232 = math.log %231 : vector<8x128xf32>
    %233 = arith.mulf %229, %232 : vector<8x128xf32>
    %c8_i32 = arith.constant 8 : i32
    %234 = arith.addi %0, %c8_i32 : i32
    %235 = arith.index_cast %234 : i32 to index
    %236 = memref.load %arg2[%235] : memref<24xf32, #tpu.memory_space<smem>>
    %237 = vector.broadcast %236 : f32 to vector<8x128xf32>
    %238 = arith.mulf %237, %233 : vector<8x128xf32>
    %239 = arith.addf %216, %238 : vector<8x128xf32>
    %c8_i32_46 = arith.constant 8 : i32
    %240 = arith.addi %0, %c8_i32_46 : i32
    %241 = arith.index_cast %240 : i32 to index
    %242 = memref.load %arg3[%241] : memref<24xf32, #tpu.memory_space<smem>>
    %243 = vector.broadcast %242 : f32 to vector<8x128xf32>
    %244 = arith.mulf %243, %233 : vector<8x128xf32>
    %245 = arith.addf %222, %244 : vector<8x128xf32>
    %c0_47 = arith.constant 0 : index
    %c0_48 = arith.constant 0 : index
    %c0_49 = arith.constant 0 : index
    %c0_50 = arith.constant 0 : index
    %246 = vector.load %arg6[%c0_47, %c0_48, %c0_49, %c0_50] : memref<1x2x8x128xf32, #tpu.memory_space<vmem>>, vector<1x1x8x128xf32>
    %247 = vector.shape_cast %246 : vector<1x1x8x128xf32> to vector<8x128xf32>
    %248 = vector.shape_cast %239 : vector<8x128xf32> to vector<1x1x8x128xf32>
    tpu.vector_store %arg6[%c0_47, %c0_48, %c0_49, %c0_50], %248 {strides = array<i32>} : memref<1x2x8x128xf32, #tpu.memory_space<vmem>>, vector<1x1x8x128xf32>,
    %c0_51 = arith.constant 0 : index
    %c1 = arith.constant 1 : index
    %c0_52 = arith.constant 0 : index
    %c0_53 = arith.constant 0 : index
    %249 = vector.load %arg6[%c0_51, %c1, %c0_52, %c0_53] : memref<1x2x8x128xf32, #tpu.memory_space<vmem>>, vector<1x1x8x128xf32>
    %250 = vector.shape_cast %249 : vector<1x1x8x128xf32> to vector<8x128xf32>
    %251 = vector.shape_cast %245 : vector<8x128xf32> to vector<1x1x8x128xf32>
    tpu.vector_store %arg6[%c0_51, %c1, %c0_52, %c0_53], %251 {strides = array<i32>} : memref<1x2x8x128xf32, #tpu.memory_space<vmem>>, vector<1x1x8x128xf32>,
    return
  }
  func.func @transform_0(%arg0: i32, %arg1: i32, %arg2: memref<24xf32, #tpu.memory_space<smem>>, %arg3: memref<24xf32, #tpu.memory_space<smem>>) -> (i32, i32) {
    %c0_i32 = arith.constant 0 : i32
    %c0_i32_0 = arith.constant 0 : i32
    return %arg0, %c0_i32 : i32, i32
  }
  func.func @transform_1(%arg0: i32, %arg1: i32, %arg2: memref<24xf32, #tpu.memory_space<smem>>, %arg3: memref<24xf32, #tpu.memory_space<smem>>) -> (i32, i32) {
    %c0_i32 = arith.constant 0 : i32
    %c0_i32_0 = arith.constant 0 : i32
    return %arg0, %c0_i32 : i32, i32
  }
  func.func @transform_2(%arg0: i32, %arg1: i32, %arg2: memref<24xf32, #tpu.memory_space<smem>>, %arg3: memref<24xf32, #tpu.memory_space<smem>>) -> (i32, i32, i32, i32) {
    %c0_i32 = arith.constant 0 : i32
    %c0_i32_0 = arith.constant 0 : i32
    %c0_i32_1 = arith.constant 0 : i32
    return %arg1, %c0_i32, %arg0, %c0_i32_0 : i32, i32, i32, i32
  }
}

</mosaic_0001>

<bundles_post_ra>
// kernel: forward.1
= control target key start
LH: loop header
LB: loop body
LE: loop exit
PB: predicated region body
PF: predicated region fallthrough
CT: control target
= control target key end

     0   :  { %s767_s0 = inlined_call_operand.vmem [shape: f32[24], index: 0, kind: input, shape index: {}]   ;;  %s768_s2 = inlined_call_operand.vmem [shape: f32[8,128], index: 2, kind: input, shape index: {}]   ;;  %s769_s3 = inlined_call_operand.vmem [shape: f32[8,128], index: 3, kind: input, shape index: {}]   ;;  %s770_s4 = inlined_call_operand.vmem [shape: f32[2,2,8,128], index: 4, kind: output, shape index: {}]   ;;  %s771_s1 = inlined_call_operand.vmem [shape: f32[24], index: 1, kind: input, shape index: {}]  }
   0x1   :  { %s9_s17 = sshll.u32 %s767_s0, 4  ;;  %s13_s20 = sshll.u32 %s771_s1, 4  ;;  %s10_s17 = int_to_ptr.vmem [resolvable:$true] %s9_s17  ;;  %s14_s20 = int_to_ptr.vmem [resolvable:$true] %s13_s20 }
   0x2   :  { %s510_s21 = scalar_lea.vmem %s10_s17, 16  ;;  %p515_p1 = scmp.lt.s32.totalorder %s10_s17, %s10_s17 }
   0x3   :  { %p511_p0 = scmp.ne.s32.totalorder %s10_s17, %s510_s21  ;;  %p516_p2 = scmp.lt.s32.totalorder %s510_s21, %s510_s21 }
   0x5   :  { %p517_p3 = por %p516_p2, %p515_p1 }
   0x7   :  { %p518_p4 = pnand %p517_p3, %p511_p0 }
   0x9   :  { %521 = shalt.err (!%p518_p4)  }
   0xa   :  { %s560_s22 = smov [#allocation3]   ;;  %s522_s23 = scalar_lea.vmem %s14_s20, 16 }
   0xb   :  { %12 = dma.vmem_to_smem %s10_s17, 16, %s560_s22, [#allocation2] }
   0xc   :  { %p523_p5 = scmp.ne.s32.totalorder %s14_s20, %s522_s23  ;;  %p527_p6 = scmp.lt.s32.totalorder %s14_s20, %s14_s20 }
   0xd   :  { %p528_p7 = scmp.lt.s32.totalorder %s522_s23, %s522_s23 }
   0xf   :  { %p529_p8 = por %p528_p7, %p527_p6 }
  0x11   :  { %p530_p9 = pnand %p529_p8, %p523_p5 }
  0x13   :  { %533 = shalt.err (!%p530_p9)  }
  0x14   :  { %s561_s0 = smov [#allocation4]  }
  0x15   :  { %16 = dma.vmem_to_smem %s14_s20, 16, %s561_s0, [#allocation2] }
  0x16   :  { %546 = dma.done.wait [#allocation2], 32 }
  0x17   :  { %547 = vsyncadd [#allocation2], 4294967264 }
  0x18   :  { %18 = sfence }
  0x19   :  { %s593_s1 = smov 0   ;;  %s595_s24 = smov 0  }
  0x1a   :  { %s597_s25 = smov 0  }
  0x1b LB: > { %s33_s26 = sadd.s32 1, %s554_s24  ;;  %p455_p10 = scmp.ge.s32.totalorder %s558_s25, 1  ;;  %s558_s25 = sphi %s597_s25, %s24_s25   ;;  %s554_s24 = sphi %s595_s24, %s773_s24   ;;  %s550_s1 = sphi %s593_s1, %s772_s1  }
  0x1c   : > { %p34_p11 = scmp.ge.s32.totalorder %s33_s26, 2  ;;  %p146_p12 = scmp.lt.s32.totalorder %s558_s25, 3 }
  0x1e   : > { %s775_s26 = smov (%p34_p11, %s33_s26), 0  ;;  %p147_p13 = pnand %p455_p10, %p146_p12 }
  0x1f   : > { %s614_s27 = smul.u32 (!%p147_p13), 12, %s550_s1  ;;  %v191_v0 = vld [vmem:[%s768_s2] sm:$0xff] (!%p147_p13)  ;;  %p182_p0 = scmp.lt.s32.totalorder (!%p147_p13), %s550_s1, 1 }
  0x20   : > { %150 = sbr.rel (%p147_p13) target bundleno = 77 (0x4d), region = 28  ;;  %v622_v1 = vld [vmem:[%s769_s3] sm:$0xff] (!%p147_p13)  ;;  %v458_v2 = vadd.f32 (!%p147_p13), 1.0, %v191_v0  ;;  %v264_v6 = vmul.f32 (!%p147_p13), %v191_v0, %v191_v0  ;;  %v461_v7 = vadd.f32 (!%p147_p13), -1.0, %v191_v0 }
  0x21   : > { %v459_v3 = vadd.f32 (!%p147_p13), 1.0, %v622_v1  ;;  %v233_v4 = vmul.f32 (!%p147_p13), %v622_v1, %v622_v1  ;;  %v460_v5 = vadd.f32 (!%p147_p13), -1.0, %v622_v1  ;;  %s193_s6 = sadd.s32 (!%p147_p13), 9, %s614_s27  ;;  %s195_s7 = sadd.s32 (!%p147_p13), 10, %s614_s27 }
  0x22   : > { %v218_v8 = vmul.f32 (!%p147_p13), %v458_v2, %v458_v2  ;;  %s630_s8 = sld [smem:[#allocation3 + %s193_s6]] (!%p147_p13)  ;;  %v308_v12 = vmul.f32 (!%p147_p13), %v461_v7, %v461_v7  ;;  %s201_s10 = sadd.s32 (!%p147_p13), 11, %s614_s27 }
  0x23   : > { %v219_v9 = vmul.f32 (!%p147_p13), %v459_v3, %v459_v3  ;;  %v249_v10 = vmul.f32 (!%p147_p13), %v460_v5, %v460_v5  ;;  %v632_v11 = vadd.f32 (!%p147_p13), %v264_v6, %v233_v4  ;;  %s634_s9 = sld [smem:[#allocation3 + %s195_s7]] (!%p147_p13)  ;;  %s239_s16 = sadd.s32 (!%p147_p13), 1, %s614_s27 }
  0x24   : > { %v638_v14 = vadd.f32 (!%p147_p13), %v233_v4, %v218_v8  ;;  %s645_s11 = sld [smem:[#allocation4 + %s193_s6]] (!%p147_p13)  ;;  %v667_v25 = vadd.f32 (!%p147_p13), %v308_v12, %v233_v4  ;;  %s255_s19 = sadd.s32 (!%p147_p13), 2, %s614_s27 }
  0x25   : > { %v636_v13 = vadd.f32 (!%p147_p13), %v219_v9, %v218_v8  ;;  %v640_v15 = vadd.f32 (!%p147_p13), %v249_v10, %v218_v8  ;;  %v642_v16 = vadd.f32 (!%p147_p13), %v264_v6, %v219_v9  ;;  %v280_v17 = vmax.f32 (!%p147_p13), %v632_v11, 1e-30  ;;  %s650_s12 = sld [smem:[#allocation3 + %s201_s10]] (!%p147_p13)  ;;  %s270_s20 = sadd.s32 (!%p147_p13), 3, %s614_s27 }
  0x26   : > { %v648_v18 = vadd.f32 (!%p147_p13), %v264_v6, %v249_v10  ;;  %s652_s13 = sld [smem:[#allocation4 + %s195_s7]] (!%p147_p13)  ;;  %v235_v20 = vmax.f32 (!%p147_p13), %v638_v14, 1e-30  ;;  %v656_v21 = vadd.f32 (!%p147_p13), %v308_v12, %v219_v9  ;;  %v674_v26 = vadd.f32 (!%p147_p13), %v308_v12, %v249_v10  ;;  %s284_s29 = sadd.s32 (!%p147_p13), 4, %s614_s27 }
  0x27   : > { %v221_v19 = vmax.f32 %v636_v13, 1e-30  ;;  %s658_s14 = sld [smem:[#allocation4 + %s201_s10]]  ;;  %v251_v22 = vmax.f32 %v640_v15, 1e-30  ;;  %492 = vlog2.f32 %v280_v17  ;;  %s298_s5 = sadd.s32 5, %s614_s27 }
  0x28   : > { %v266_v23 = vmax.f32 %v642_v16, 1e-30  ;;  %s663_s15 = sld [smem:[#allocation3 + %s614_s27]]  ;;  %v294_v24 = vmax.f32 %v648_v18, 1e-30  ;;  %v199_v30 = vstv %s630_s8  ;;  %s314_s8 = sadd.s32 6, %s614_s27 }
  0x29   : > { %494 = vlog2.f32 %v221_v19  ;;  %s670_s17 = sld [smem:[#allocation4 + %s614_s27]]  ;;  %v197_v27 = vstv %s634_s9  ;;  %v310_v28 = vmax.f32 %v656_v21, 1e-30  ;;  %v324_v33 = vmax.f32 %v667_v25, 1e-30  ;;  %s777_s1 = smov (!%p182_p0, %s550_s1), 1 }
  0x2a   : > { %496 = vlog2.f32 %v235_v20  ;;  %s672_s18 = sld [smem:[#allocation3 + %s239_s16]]  ;;  %v198_v29 = vmul.f32 %v197_v27, %v191_v0  ;;  %v210_v35 = vstv %s645_s11  ;;  %v338_v37 = vmax.f32 %v674_v26, 1e-30  ;;  %s328_s11 = sadd.s32 7, %s614_s27 }
  0x2b   : > { %498 = vlog2.f32 %v251_v22  ;;  %s681_s21 = sld [smem:[#allocation4 + %s239_s16]]  ;;  %v203_v31 = vstv %s650_s12 }
  0x2c   : > { %s683_s22 = sld [smem:[#allocation3 + %s255_s19]]  ;;  %500 = vlog2.f32 %v266_v23  ;;  %v208_v32 = vstv %s652_s13  ;;  %v200_v38 = vadd.f32 %v199_v30, %v198_v29  ;;  %v204_v39 = vmul.f32 %v203_v31, %v622_v1  ;;  %s342_s13 = sadd.s32 8, %s614_s27 }
  0x2d   : > { %s687_s23 = sld [smem:[#allocation4 + %s255_s19]]  ;;  %502 = vlog2.f32 %v294_v24  ;;  %v209_v34 = vmul.f32 %v208_v32, %v191_v0  ;;  %v213_v36 = vstv %s658_s14 }
  0x2e   : > { %s689_s0 = sld [smem:[#allocation3 + %s270_s20]]  ;;  %504 = vlog2.f32 %v310_v28  ;;  %v214_v41 = vmul.f32 %v213_v36, %v622_v1  ;;  %v226_v44 = vstv %s663_s15  ;;  %v205_v48 = vadd.f32 %v204_v39, %v200_v38 }
  0x2f   : > { %s694_s28 = sld [smem:[#allocation4 + %s270_s20]]  ;;  %v211_v40 = vadd.f32 %v210_v35, %v209_v34  ;;  %506 = vlog2.f32 %v324_v33  ;;  %v230_v45 = vstv %s670_s17  ;;  %s465_s17 = sshll.u32 %s777_s1, 4 }
  0x30   : > { %s698_s30 = sld [smem:[#allocation3 + %s284_s29]]  ;;  %508 = vlog2.f32 %v338_v37  ;;  %v241_v50 = vstv %s672_s18  ;;  %s189_s20 = scalar_lea.vmem %s770_s4, %s465_s17 }
  0x31   : > { %s703_s6 = sld [smem:[#allocation4 + %s284_s29]]  ;;  %v493_v42 = vpop.eup %492  ;;  %v245_v51 = vstv %s681_s21  ;;  %v215_v53 = vadd.f32 %v214_v41, %v211_v40 }
  0x32   : > { %v282_v46 = vmul.f32 0.6931472, %v493_v42  ;;  %s707_s7 = sld [smem:[#allocation3 + %s298_s5]]  ;;  %v257_v55 = vstv %s683_s22 }
  0x33   : > { %v495_v43 = vpop.eup %494  ;;  %v261_v56 = vstv %s687_s23  ;;  %s714_s9 = sld [smem:[#allocation4 + %s298_s5]] }
  0x34   : > { %v497_v47 = vpop.eup %496  ;;  %v223_v49 = vmul.f32 0.6931472, %v495_v43  ;;  %v272_v60 = vstv %s689_s0  ;;  %s719_s10 = sld [smem:[#allocation3 + %s314_s8]]  ;;  %v283_v1 = vmul.f32 %v282_v46, %v632_v11 }
  0x35   : > { %v499_v52 = vpop.eup %498  ;;  %v237_v54 = vmul.f32 0.6931472, %v497_v47  ;;  %v276_v61 = vstv %s694_s28  ;;  %s725_s12 = sld [smem:[#allocation4 + %s314_s8]] }
  0x36   : > { %v501_v57 = vpop.eup %500  ;;  %v224_v58 = vmul.f32 %v223_v49, %v636_v13  ;;  %v253_v59 = vmul.f32 0.6931472, %v499_v52  ;;  %v286_v2 = vstv %s698_s30  ;;  %s731_s14 = sld [smem:[#allocation3 + %s328_s11]] }
  0x37   : > { %v503_v62 = vpop.eup %502  ;;  %v238_v63 = vmul.f32 %v237_v54, %v638_v14  ;;  %v268_v0 = vmul.f32 0.6931472, %v501_v57  ;;  %v290_v12 = vstv %s703_s6  ;;  %s733_s15 = sld [smem:[#allocation4 + %s328_s11]]  ;;  %v287_v30 = vmul.f32 %v286_v2, %v283_v1 }
  0x38   : > { %v227_v3 = vmul.f32 %v226_v44, %v224_v58  ;;  %v231_v4 = vmul.f32 %v230_v45, %v224_v58  ;;  %v254_v5 = vmul.f32 %v253_v59, %v640_v15  ;;  %v296_v6 = vmul.f32 0.6931472, %v503_v62  ;;  %v505_v7 = vpop.eup %504  ;;  %s737_s27 = sld [smem:[#allocation3 + %s342_s13]] }
  0x39   : > { %v242_v8 = vmul.f32 %v241_v50, %v238_v63  ;;  %v246_v9 = vmul.f32 %v245_v51, %v238_v63  ;;  %v269_v10 = vmul.f32 %v268_v0, %v642_v16  ;;  %v507_v15 = vpop.eup %506  ;;  %v300_v22 = vstv %s707_s7  ;;  %s739_s16 = sld [smem:[#allocation4 + %s342_s13]] }
  0x3a   : > { %v228_v11 = vadd.f32 %v227_v3, %v205_v48  ;;  %v232_v13 = vadd.f32 %v231_v4, %v215_v53  ;;  %v258_v14 = vmul.f32 %v257_v55, %v254_v5  ;;  %v262_v17 = vmul.f32 %v261_v56, %v254_v5  ;;  %v509_v16 = vpop.eup %508 }
  0x3b   : > { %v273_v19 = vmul.f32 %v272_v60, %v269_v10  ;;  %v297_v20 = vmul.f32 %v296_v6, %v648_v18  ;;  %v312_v23 = vmul.f32 0.6931472, %v505_v7  ;;  %v277_v28 = vmul.f32 %v276_v61, %v269_v10 }
  0x3c   : > { %v243_v24 = vadd.f32 %v242_v8, %v228_v11  ;;  %v247_v27 = vadd.f32 %v246_v9, %v232_v13  ;;  %v326_v29 = vmul.f32 0.6931472, %v507_v15  ;;  %v304_v31 = vstv %s714_s9 }
  0x3d   : > { %v313_v32 = vmul.f32 %v312_v23, %v656_v21  ;;  %v291_v34 = vmul.f32 %v290_v12, %v283_v1  ;;  %v316_v35 = vstv %s719_s10  ;;  %v301_v36 = vmul.f32 %v300_v22, %v297_v20 }
  0x3e   : > { %v259_v18 = vadd.f32 %v258_v14, %v243_v24  ;;  %v263_v33 = vadd.f32 %v262_v17, %v247_v27  ;;  %v320_v37 = vstv %s725_s12  ;;  %v340_v38 = vmul.f32 0.6931472, %v509_v16 }
  0x3f   : > { %v305_v41 = vmul.f32 %v304_v31, %v297_v20  ;;  %v327_v42 = vmul.f32 %v326_v29, %v667_v25  ;;  %v317_v43 = vmul.f32 %v316_v35, %v313_v32  ;;  %v330_v44 = vstv %s731_s14 }
  0x40   : > { %v274_v39 = vadd.f32 %v273_v19, %v259_v18  ;;  %v278_v40 = vadd.f32 %v277_v28, %v263_v33  ;;  %v334_v21 = vstv %s733_s15  ;;  %v321_v47 = vmul.f32 %v320_v37, %v313_v32 }
  0x41   : > { %v341_v48 = vmul.f32 %v340_v38, %v674_v26  ;;  %v344_v49 = vstv %s737_s27  ;;  %v348_v50 = vstv %s739_s16  ;;  %v331_v53 = vmul.f32 %v330_v44, %v327_v42 }
  0x42   : > { %v288_v45 = vadd.f32 %v287_v30, %v274_v39  ;;  %v292_v46 = vadd.f32 %v291_v34, %v278_v40  ;;  %v335_v54 = vmul.f32 %v334_v21, %v327_v42 }
  0x43   : > { %v345_v25 = vmul.f32 %v344_v49, %v341_v48  ;;  %v349_v57 = vmul.f32 %v348_v50, %v341_v48 }
  0x44   : > { %v302_v51 = vadd.f32 %v301_v36, %v288_v45  ;;  %v306_v52 = vadd.f32 %v305_v41, %v292_v46 }
  0x46   : > { %v318_v55 = vadd.f32 %v317_v43, %v302_v51  ;;  %v322_v56 = vadd.f32 %v321_v47, %v306_v52 }
  0x48   : > { %v332_v58 = vadd.f32 %v331_v53, %v318_v55  ;;  %v336_v59 = vadd.f32 %v335_v54, %v322_v56 }
  0x4a   : > { %v346_v60 = vadd.f32 %v345_v25, %v332_v58  ;;  %v350_v61 = vadd.f32 %v349_v57, %v336_v59 }
  0x4c   : > { %351 = vst [vmem:[%s189_s20] sm:$0xff] %v346_v60  ;;  %462 = vst [vmem:[%s189_s20 + $0x8] sm:$0xff] %v350_v61 }
  0x4d PF: > { %s24_s25 = sadd.s32 1, %s558_s25   ;;  %s772_s1 = smov %s554_s24 }
  0x4e   : > { %p21_p1 = scmp.ge.s32.totalorder %s24_s25, 4   ;;  %s773_s24 = smov %s775_s26 }
  0x50   :  { %23 = sbr.rel (!%p21_p1) target bundleno = 27 (0x1b), region = 62 }

</bundles_post_ra>
